<compile_context>
chip_gen: v7x
topology: tpu7x:2x2x1
jax: 0.10.0
libtpu: 0.0.40
codegen_flags: <defaults>
</compile_context>

<pallas_src>
import functools

import numpy as np
import jax
import jax.numpy as jnp
from jax.experimental import pallas as pl
from jax.experimental.pallas import tpu as pltpu

BN_EPS = 1e-5                              # PyTorch BatchNorm2d default
_N_STATS_SHARDS = 2                        # lets v7x's 2 TensorCores split Pass 1
_DEFAULT_SCOPED_VMEM = 14 * 1024 * 1024    # stay under v5e's ~16 MiB scoped default


def _round_up(x, m):
    return ((x + m - 1) // m) * m


def _mult8_floor(x):
    return max(8, (x // 8) * 8)


# ------------------------------------------------------------------------------
# Pass 1: per-channel (sum, sum_of_squares).  Outer "parallel" axis = independent
# shard accumulators (megacore); inner "arbitrary" axis = row-tile reduction.
# Zero-padded rows contribute nothing to either sum.
# ------------------------------------------------------------------------------
def _bn_stats_kernel(x_ref, part_ref, acc_ref):
    i = pl.program_id(1)

    @pl.when(i == 0)
    def _():
        acc_ref[...] = jnp.zeros_like(acc_ref)

    x = x_ref[...].astype(jnp.float32)                        # (Ts, Cin)
    # Ones-row matmul -> per-channel partial sums on the MXU (avoids a long
    # cross-sublane XLU reduce; the pass is DMA-bound anyway).
    ones_row = jnp.ones((1, x.shape[0]), jnp.float32)
    acc_ref[0:1, :] += jnp.dot(ones_row, x, preferred_element_type=jnp.float32)
    acc_ref[1:2, :] += jnp.dot(ones_row, x * x, preferred_element_type=jnp.float32)

    @pl.when(i == pl.num_programs(1) - 1)
    def _():
        part_ref[...] = acc_ref[...].reshape(part_ref.shape)


def _channel_sums(x_flat, tile_rows, compiler_params):
    """x_flat: (Rpad, Cin) with Rpad % (tile_rows * _N_STATS_SHARDS) == 0.
    Returns f32 (2, Cin): [sum, sum_of_squares] over all rows."""
    rows, cin = x_flat.shape
    assert rows % (tile_rows * _N_STATS_SHARDS) == 0
    spp = rows // (tile_rows * _N_STATS_SHARDS)        # steps per shard
    parts = pl.pallas_call(
        _bn_stats_kernel,
        out_shape=jax.ShapeDtypeStruct((_N_STATS_SHARDS, 2, cin), jnp.float32),
        grid_spec=pltpu.PrefetchScalarGridSpec(
            num_scalar_prefetch=0,
            grid=(_N_STATS_SHARDS, spp),
            in_specs=[pl.BlockSpec((tile_rows, cin),
                                   lambda s, i: (s * spp + i, 0))],
            out_specs=pl.BlockSpec((1, 2, cin), lambda s, i: (s, 0, 0)),
            scratch_shapes=[pltpu.VMEM((2, cin), jnp.float32)],
        ),
        compiler_params=compiler_params,
    )(x_flat)
    return jnp.sum(parts, axis=0)                      # (2, Cin)


# ------------------------------------------------------------------------------
# Pass 2: BN affine + ReLU + 2x2 average pool + 1x1 conv, tiled over output rows.
# x_ref holds the four 2x2-window corners as a leading axis of size 4; the pool is
# commuted ahead of the conv (both are linear), so the MXU runs on Npix/4 rows.
# ------------------------------------------------------------------------------
def _transition_kernel(ss_ref, w_ref, x_ref, o_ref):
    x = x_ref[...].astype(jnp.float32)               # (4, T, Cin)
    scale = ss_ref[0:1, :]                           # (1, Cin): inv_std * gamma
    shift = ss_ref[1:2, :]                           # (1, Cin): beta - mean * scale
    xr = jnp.maximum(x * scale + shift, 0.0)         # BN + ReLU (f32 VPU)
    pooled = 0.25 * (xr[0] + xr[1] + xr[2] + xr[3])  # (T, Cin) 2x2/stride-2 pool
    o_ref[...] = jnp.dot(pooled.astype(w_ref.dtype), w_ref[...],
                         preferred_element_type=jnp.float32).astype(o_ref.dtype)


@functools.partial(jax.jit,
                   static_argnames=("conv_dtype", "row_tile", "vmem_budget_bytes"))
def transition_block(x_nchw, gamma, beta, w, *, conv_dtype=jnp.float32,
                     row_tile=1024, vmem_budget_bytes=48 * 1024 * 1024):
    """x_nchw: (B, Cin, H, W) f32 -> (B, Cout, H//2, W//2) f32.

    conv_dtype=jnp.bfloat16 stores the rearranged activations + weight in bf16
    (halves HBM traffic on the dominant pass; recommended on v6e/v7x).
    Elementwise BN/ReLU math and the MXU accumulation stay f32.
    """
    B, Cin, H, W = x_nchw.shape
    Cout = w.shape[1]
    Ho, Wo = H // 2, W // 2                   # AvgPool2d(2,2) floors odd dims
    Npix, Npix_out = B * H * W, B * Ho * Wo
    even = (H % 2 == 0) and (W % 2 == 0)
    x_bytes = np.dtype(conv_dtype).itemsize

    # Lane-dense output padding only pays off when Cout is already >= 128 (true
    # for real DenseNet transitions); for small Cout it 4x's the write traffic.
    Cout_pad = _round_up(Cout, 128) if Cout >= 128 else Cout

    # ---- Row tile: multiple of 8 near the target, auto-shrunk to the VMEM budget.
    tile = _mult8_floor(min(row_tile, max(Npix_out, 8)))

    def vmem_need(t):
        main = (2 * 4 * t * Cin * x_bytes           # pipelined x tile (2 buffers)
                + 2 * t * Cout_pad * 4              # pipelined f32 output tile
                + 2 * Cin * Cout_pad * x_bytes      # resident weight
                + 5 * t * Cin * 4)                  # f32 upcast + pooled temporaries
        stats = 2 * 4 * t * Cin * x_bytes + 4 * t * Cin * 4
        return max(main, stats)

    while tile > 8 and vmem_need(tile) > vmem_budget_bytes:
        tile = _mult8_floor(tile // 2)

    vmem_limit = vmem_budget_bytes if vmem_need(tile) > _DEFAULT_SCOPED_VMEM else None
    # "parallel" axes are what Mosaic shards across v7x's two TensorCores.
    # TODO(synk): verify on v7x hardware whether CORE_PARALLEL is needed instead.
    cp_main = pltpu.CompilerParams(dimension_semantics=("parallel",),
                                   vmem_limit_bytes=vmem_limit)
    cp_stats = pltpu.CompilerParams(dimension_semantics=("parallel", "arbitrary"),
                                    vmem_limit_bytes=vmem_limit)

    # ---- Single rearrangement: NCHW -> (4 corners, rows, Cin) [+cast +row pad]. ----
    Npix_pad = _round_up(Npix_out, tile * _N_STATS_SHARDS)
    x_src = x_nchw if even else x_nchw[:, :, :2 * Ho, :2 * Wo]
    x4 = x_src.reshape(B, Cin, Ho, 2, Wo, 2)
    x4 = jnp.transpose(x4, (3, 5, 0, 2, 4, 1)).reshape(4, Npix_out, Cin)
    x4 = x4.astype(conv_dtype)
    if Npix_pad != Npix_out:
        x4 = jnp.pad(x4, ((0, 0), (0, Npix_pad - Npix_out), (0, 0)))

    # ---- Pass 1: BN batch statistics (training-mode BatchNorm2d). ----
    if even:
        # Free leading-dim reshape of x4: stats see every input pixel exactly once
        # (pad rows are zero; we divide by the true pixel count below).
        sums = _channel_sums(x4.reshape(4 * Npix_pad, Cin), 4 * tile, cp_stats)
    else:
        # Odd H/W: PyTorch BN statistics include the row/col the pool crops, so
        # fall back to a flattened-NHWC read of the full tensor (rare path).
        xf = jnp.transpose(x_nchw, (0, 2, 3, 1)).reshape(Npix, Cin).astype(conv_dtype)
        st = _mult8_floor(min(4 * tile, max(Npix, 8)))
        rpad = _round_up(Npix, st * _N_STATS_SHARDS) - Npix
        if rpad:
            xf = jnp.pad(xf, ((0, rpad), (0, 0)))
        sums = _channel_sums(xf, st, cp_stats)

    # Fold BN (batch mean/var) + gamma/beta into a single scale/shift (tiny XLA).
    n = jnp.float32(Npix)
    mean = sums[0] / n
    var = jnp.maximum(sums[1] / n - mean * mean, 0.0)   # clamp cancellation noise
    scale = jax.lax.rsqrt(var + BN_EPS) * gamma.astype(jnp.float32)
    shift = beta.astype(jnp.float32) - mean * scale
    scale_shift = jnp.stack([scale, shift], axis=0)     # (2, Cin) f32

    # ---- Pass 2: row-tiled BN-affine + ReLU + pool + 1x1 conv. ----
    w_p = w.astype(conv_dtype)
    if Cout_pad != Cout:
        w_p = jnp.pad(w_p, ((0, 0), (0, Cout_pad - Cout)))

    out_flat = pl.pallas_call(
        _transition_kernel,
        out_shape=jax.ShapeDtypeStruct((Npix_pad, Cout_pad), jnp.float32),
        grid_spec=pltpu.PrefetchScalarGridSpec(
            num_scalar_prefetch=0,
            grid=(Npix_pad // tile,),
            in_specs=[
                pl.BlockSpec((2, Cin), lambda i: (0, 0)),           # scale/shift
                pl.BlockSpec((Cin, Cout_pad), lambda i: (0, 0)),    # weight (resident)
                pl.BlockSpec((4, tile, Cin), lambda i: (0, i, 0)),  # x tile (pipelined)
            ],
            out_specs=pl.BlockSpec((tile, Cout_pad), lambda i: (i, 0)),
        ),
        compiler_params=cp_main,
    )(scale_shift, w_p, x4)

    # (rows, Cout_pad) -> (B, Ho, Wo, Cout) -> NCHW; slice+reshape+transpose fuse
    # into one XLA copy under jit.
    out = out_flat[:Npix_out, :Cout].reshape(B, Ho, Wo, Cout)
    return jnp.transpose(out, (0, 3, 1, 2))


def _reference(x_nchw, gamma, beta, w):
    """Pure-JAX reference: BN(train) -> ReLU -> 1x1 conv -> AvgPool2d(2,2), NCHW."""
    mean = jnp.mean(x_nchw, axis=(0, 2, 3), keepdims=True)
    var = jnp.mean(x_nchw ** 2, axis=(0, 2, 3), keepdims=True) - mean ** 2
    xn = (x_nchw - mean) * jax.lax.rsqrt(var + BN_EPS)
    xn = xn * gamma[None, :, None, None] + beta[None, :, None, None]
    xr = jnp.maximum(xn, 0.0)
    y = jnp.einsum("bchw,cd->bdhw", xr, w)
    B, Cout, H, W = y.shape
    y = y.reshape(B, Cout, H // 2, 2, W // 2, 2)
    return jnp.mean(y, axis=(3, 5))


if __name__ == "__main__":
    B, Cin, H, W = 2, 16, 16, 16     # num_input_features=16
    Cout = 32                        # num_output_features=32

    key = jax.random.PRNGKey(0)
    kx, kw = jax.random.split(key)
    x = jax.random.normal(kx, (B, Cin, H, W), dtype=jnp.float32)

    # Deterministic synthetic parameters (shapes follow the module __init__).
    gamma = jnp.linspace(0.5, 1.5, Cin, dtype=jnp.float32)      # BN weight
    beta = jnp.linspace(-0.1, 0.1, Cin, dtype=jnp.float32)      # BN bias
    # PyTorch conv weight is (Cout, Cin, 1, 1); we keep the squeezed transpose.
    w = jax.random.normal(kw, (Cin, Cout), dtype=jnp.float32) * 0.1

    ref = _reference(x, gamma, beta, w)

    # Small row_tile so the toy shape exercises multi-step grids
    # (main grid = 4 steps, stats grid = 2 shards x 2 steps).
    out = transition_block(x, gamma, beta, w, conv_dtype=jnp.float32, row_tile=32)
    out = jax.block_until_ready(out)
    assert out.shape == (B, Cout, H // 2, W // 2), out.shape
    np.testing.assert_allclose(np.asarray(out), np.asarray(ref), atol=1e-4, rtol=1e-4)

    # Default (production) tiling on the same shape: exercises the zero-row-padding
    # path (Npix_out 128 -> 256) for both passes.
    out_d = jax.block_until_ready(transition_block(x, gamma, beta, w))
    np.testing.assert_allclose(np.asarray(out_d), np.asarray(ref), atol=1e-4, rtol=1e-4)

    # bf16 activation/weight I/O (v6e/v7x recommendation); looser tolerance since
    # both the batch statistics and the matmul operands see bf16 rounding.
    out_bf16 = jax.block_until_ready(
        transition_block(x, gamma, beta, w, conv_dtype=jnp.bfloat16, row_tile=32))
    np.testing.assert_allclose(np.asarray(out_bf16), np.asarray(ref),
                               atol=2e-2, rtol=2e-2)

    print("KERNEL_OK")
</pallas_src>

<mosaic_0001>
module attributes {stable_mosaic.version = 11 : i64} {
  func.func @_bn_stats_kernel(%arg0: i32, %arg1: i32, %arg2: memref<128x16xf32, #tpu.memory_space<vmem>>, %arg3: memref<1x2x16xf32, #tpu.memory_space<vmem>>, %arg4: memref<2x16xf32, #tpu.memory_space<vmem>>) attributes {dimension_semantics = [#tpu.dimension_semantics<parallel>, #tpu.dimension_semantics<arbitrary>], iteration_bounds = array<i64: 2, 2>, scalar_prefetch = 0 : i64, scratch_operands = 1 : i64, tpu.core_type = #tpu.core_type<tc>, window_params = [{transform_indices = @transform_0, window_bounds = array<i64: 128, 16>}, {transform_indices = @transform_1, window_bounds = array<i64: 1, 2, 16>}]} {
    %c0_i32 = arith.constant 0 : i32
    %0 = arith.cmpi eq, %arg1, %c0_i32 : i32
    %1 = arith.extui %0 : i1 to i32
    %c0_i32_0 = arith.constant 0 : i32
    %2 = arith.cmpi ne, %1, %c0_i32_0 : i32
    scf.if %2 {
      %cst_12 = arith.constant 0.000000e+00 : f32
      %17 = vector.broadcast %cst_12 : f32 to vector<2x16xf32>
      %c0_13 = arith.constant 0 : index
      %c0_14 = arith.constant 0 : index
      %18 = vector.load %arg4[%c0_13, %c0_14] : memref<2x16xf32, #tpu.memory_space<vmem>>, vector<2x16xf32>
      tpu.vector_store %arg4[%c0_13, %c0_14], %17 {strides = array<i32>} : memref<2x16xf32, #tpu.memory_space<vmem>>, vector<2x16xf32>,
    } else {
    }
    %c0 = arith.constant 0 : index
    %c0_1 = arith.constant 0 : index
    %3 = vector.load %arg2[%c0, %c0_1] : memref<128x16xf32, #tpu.memory_space<vmem>>, vector<128x16xf32>
    %cst = arith.constant 1.000000e+00 : f32
    %4 = vector.broadcast %cst : f32 to vector<1x128xf32>
    %c0_2 = arith.constant 0 : index
    %c0_3 = arith.constant 0 : index
    %5 = vector.load %arg4[%c0_2, %c0_3] : memref<2x16xf32, #tpu.memory_space<vmem>>, vector<1x16xf32>
    %cst_4 = arith.constant dense<0.000000e+00> : vector<1x16xf32>
    %6 = tpu.matmul %4, %3, %cst_4 {dimension_numbers = #tpu.dot_dimension_numbers<[1], [0], [0], [1], [0, 0, 1, 1], [], []>} : vector<1x128xf32>, vector<128x16xf32>, vector<1x16xf32> -> vector<1x16xf32>
    %7 = arith.addf %5, %6 : vector<1x16xf32>
    %c0_5 = arith.constant 0 : index
    %c0_6 = arith.constant 0 : index
    %8 = vector.load %arg4[%c0_5, %c0_6] : memref<2x16xf32, #tpu.memory_space<vmem>>, vector<1x16xf32>
    tpu.vector_store %arg4[%c0_5, %c0_6], %7 {strides = array<i32>} : memref<2x16xf32, #tpu.memory_space<vmem>>, vector<1x16xf32>,
    %c1 = arith.constant 1 : index
    %c0_7 = arith.constant 0 : index
    %9 = vector.load %arg4[%c1, %c0_7] : memref<2x16xf32, #tpu.memory_space<vmem>>, vector<1x16xf32>
    %10 = arith.mulf %3, %3 : vector<128x16xf32>
    %cst_8 = arith.constant dense<0.000000e+00> : vector<1x16xf32>
    %11 = tpu.matmul %4, %10, %cst_8 {dimension_numbers = #tpu.dot_dimension_numbers<[1], [0], [0], [1], [0, 0, 1, 1], [], []>} : vector<1x128xf32>, vector<128x16xf32>, vector<1x16xf32> -> vector<1x16xf32>
    %12 = arith.addf %9, %11 : vector<1x16xf32>
    %c1_9 = arith.constant 1 : index
    %c0_10 = arith.constant 0 : index
    %13 = vector.load %arg4[%c1_9, %c0_10] : memref<2x16xf32, #tpu.memory_space<vmem>>, vector<1x16xf32>
    tpu.vector_store %arg4[%c1_9, %c0_10], %12 {strides = array<i32>} : memref<2x16xf32, #tpu.memory_space<vmem>>, vector<1x16xf32>,
    %c1_i32 = arith.constant 1 : i32
    %14 = arith.cmpi eq, %arg1, %c1_i32 : i32
    %15 = arith.extui %14 : i1 to i32
    %c0_i32_11 = arith.constant 0 : i32
    %16 = arith.cmpi ne, %15, %c0_i32_11 : i32
    scf.if %16 {
      %c0_12 = arith.constant 0 : index
      %c0_13 = arith.constant 0 : index
      %17 = vector.load %arg4[%c0_12, %c0_13] : memref<2x16xf32, #tpu.memory_space<vmem>>, vector<2x16xf32>
      %18 = vector.shape_cast %17 : vector<2x16xf32> to vector<1x2x16xf32>
      %c0_14 = arith.constant 0 : index
      %c0_15 = arith.constant 0 : index
      %c0_16 = arith.constant 0 : index
      %19 = vector.load %arg3[%c0_14, %c0_15, %c0_16] : memref<1x2x16xf32, #tpu.memory_space<vmem>>, vector<1x2x16xf32>
      tpu.vector_store %arg3[%c0_14, %c0_15, %c0_16], %18 {strides = array<i32>} : memref<1x2x16xf32, #tpu.memory_space<vmem>>, vector<1x2x16xf32>,
    } else {
    }
    return
  }
  func.func @transform_0(%arg0: i32, %arg1: i32) -> (i32, i32) {
    %c2_i32 = arith.constant 2 : i32
    %0 = arith.muli %arg0, %c2_i32 : i32
    %1 = arith.addi %0, %arg1 : i32
    %c0_i32 = arith.constant 0 : i32
    %c0_i32_0 = arith.constant 0 : i32
    return %1, %c0_i32 : i32, i32
  }
  func.func @transform_1(%arg0: i32, %arg1: i32) -> (i32, i32, i32) {
    %c0_i32 = arith.constant 0 : i32
    %c0_i32_0 = arith.constant 0 : i32
    %c0_i32_1 = arith.constant 0 : i32
    return %arg0, %c0_i32, %c0_i32_0 : i32, i32, i32
  }
}

module attributes {stable_mosaic.version = 11 : i64} {
  func.func @_transition_kernel(%arg0: i32, %arg1: memref<2x16xf32, #tpu.memory_space<vmem>>, %arg2: memref<16x32xf32, #tpu.memory_space<vmem>>, %arg3: memref<4x32x16xf32, #tpu.memory_space<vmem>>, %arg4: memref<32x32xf32, #tpu.memory_space<vmem>>) attributes {dimension_semantics = [#tpu.dimension_semantics<parallel>], iteration_bounds = array<i64: 4>, scalar_prefetch = 0 : i64, scratch_operands = 0 : i64, tpu.core_type = #tpu.core_type<tc>, window_params = [{pipeline_mode = #tpu.pipeline_mode<synchronous>, transform_indices = @transform_0, window_bounds = array<i64: 2, 16>}, {pipeline_mode = #tpu.pipeline_mode<synchronous>, transform_indices = @transform_1, window_bounds = array<i64: 16, 32>}, {transform_indices = @transform_2, window_bounds = array<i64: 4, 32, 16>}, {transform_indices = @transform_3, window_bounds = array<i64: 32, 32>}]} {
    %c0 = arith.constant 0 : index
    %c0_0 = arith.constant 0 : index
    %c0_1 = arith.constant 0 : index
    %0 = vector.load %arg3[%c0, %c0_0, %c0_1] : memref<4x32x16xf32, #tpu.memory_space<vmem>>, vector<4x32x16xf32>
    %c0_2 = arith.constant 0 : index
    %c0_3 = arith.constant 0 : index
    %1 = vector.load %arg1[%c0_2, %c0_3] : memref<2x16xf32, #tpu.memory_space<vmem>>, vector<1x16xf32>
    %c1 = arith.constant 1 : index
    %c0_4 = arith.constant 0 : index
    %2 = vector.load %arg1[%c1, %c0_4] : memref<2x16xf32, #tpu.memory_space<vmem>>, vector<1x16xf32>
    %3 = vector.shape_cast %1 : vector<1x16xf32> to vector<1x1x16xf32>
    %4 = vector.broadcast %3 : vector<1x1x16xf32> to vector<4x32x16xf32>
    %5 = arith.mulf %0, %4 : vector<4x32x16xf32>
    %6 = vector.shape_cast %2 : vector<1x16xf32> to vector<1x1x16xf32>
    %7 = vector.broadcast %6 : vector<1x1x16xf32> to vector<4x32x16xf32>
    %8 = arith.addf %5, %7 : vector<4x32x16xf32>
    %cst = arith.constant 0.000000e+00 : f32
    %9 = vector.broadcast %cst : f32 to vector<4x32x16xf32>
    %10 = arith.maximumf %8, %9 : vector<4x32x16xf32>
    %11 = vector.extract_strided_slice %10 {offsets = [0, 0, 0], sizes = [1, 32, 16], strides = [1, 1, 1]} : vector<4x32x16xf32> to vector<1x32x16xf32>
    %12 = vector.shape_cast %11 : vector<1x32x16xf32> to vector<32x16xf32>
    %13 = vector.extract_strided_slice %10 {offsets = [1, 0, 0], sizes = [1, 32, 16], strides = [1, 1, 1]} : vector<4x32x16xf32> to vector<1x32x16xf32>
    %14 = vector.shape_cast %13 : vector<1x32x16xf32> to vector<32x16xf32>
    %15 = arith.addf %12, %14 : vector<32x16xf32>
    %16 = vector.extract_strided_slice %10 {offsets = [2, 0, 0], sizes = [1, 32, 16], strides = [1, 1, 1]} : vector<4x32x16xf32> to vector<1x32x16xf32>
    %17 = vector.shape_cast %16 : vector<1x32x16xf32> to vector<32x16xf32>
    %18 = arith.addf %15, %17 : vector<32x16xf32>
    %19 = vector.extract_strided_slice %10 {offsets = [3, 0, 0], sizes = [1, 32, 16], strides = [1, 1, 1]} : vector<4x32x16xf32> to vector<1x32x16xf32>
    %20 = vector.shape_cast %19 : vector<1x32x16xf32> to vector<32x16xf32>
    %21 = arith.addf %18, %20 : vector<32x16xf32>
    %cst_5 = arith.constant 2.500000e-01 : f32
    %22 = vector.broadcast %cst_5 : f32 to vector<32x16xf32>
    %23 = arith.mulf %22, %21 : vector<32x16xf32>
    %c0_6 = arith.constant 0 : index
    %c0_7 = arith.constant 0 : index
    %24 = vector.load %arg2[%c0_6, %c0_7] : memref<16x32xf32, #tpu.memory_space<vmem>>, vector<16x32xf32>
    %cst_8 = arith.constant dense<0.000000e+00> : vector<32x32xf32>
    %25 = tpu.matmul %23, %24, %cst_8 {dimension_numbers = #tpu.dot_dimension_numbers<[1], [0], [0], [1], [0, 0, 1, 1], [], []>} : vector<32x16xf32>, vector<16x32xf32>, vector<32x32xf32> -> vector<32x32xf32>
    %c0_9 = arith.constant 0 : index
    %c0_10 = arith.constant 0 : index
    %26 = vector.load %arg4[%c0_9, %c0_10] : memref<32x32xf32, #tpu.memory_space<vmem>>, vector<32x32xf32>
    tpu.vector_store %arg4[%c0_9, %c0_10], %25 {strides = array<i32>} : memref<32x32xf32, #tpu.memory_space<vmem>>, vector<32x32xf32>,
    return
  }
  func.func @transform_0(%arg0: i32) -> (i32, i32) {
    %c0_i32 = arith.constant 0 : i32
    %c0_i32_0 = arith.constant 0 : i32
    %c0_i32_1 = arith.constant 0 : i32
    return %c0_i32, %c0_i32_0 : i32, i32
  }
  func.func @transform_1(%arg0: i32) -> (i32, i32) {
    %c0_i32 = arith.constant 0 : i32
    %c0_i32_0 = arith.constant 0 : i32
    %c0_i32_1 = arith.constant 0 : i32
    return %c0_i32, %c0_i32_0 : i32, i32
  }
  func.func @transform_2(%arg0: i32) -> (i32, i32, i32) {
    %c0_i32 = arith.constant 0 : i32
    %c0_i32_0 = arith.constant 0 : i32
    %c0_i32_1 = arith.constant 0 : i32
    return %c0_i32, %arg0, %c0_i32_0 : i32, i32, i32
  }
  func.func @transform_3(%arg0: i32) -> (i32, i32) {
    %c0_i32 = arith.constant 0 : i32
    %c0_i32_0 = arith.constant 0 : i32
    return %arg0, %c0_i32 : i32, i32
  }
}

</mosaic_0001>

<bundles_post_ra>
// kernel: transition_block.2
= control target key start
LH: loop header
LB: loop body
LE: loop exit
PB: predicated region body
PF: predicated region fallthrough
CT: control target
= control target key end

     0   :  { %s666_s6 = smov 0   ;;  %s668_s7 = smov 0   ;;  %s761_s0 = inlined_call_operand.vmem [shape: f32[512,16], index: 0, kind: input, shape index: {}]   ;;  %s762_s1 = inlined_call_operand.vmem [shape: f32[2,2,16], index: 1, kind: output, shape index: {}]  }
   0x1   :  { %s670_s8 = smov 0   ;;  %s672_s9 = smov 0  }
   0x2   :  { %s674_s10 = smov 0  }
   0x3 LB: > { %s20_s11 = sadd.s32 1, %s641_s8  ;;  %s23_s12 = sadd.s32 1, %s645_s9  ;;  %s649_s10 = sphi %s674_s10, %s11_s10   ;;  %s645_s9 = sphi %s672_s9, %s766_s9   ;;  %s641_s8 = sphi %s670_s8, %s765_s8   ;;  %s637_s7 = sphi %s668_s7, %s764_s7   ;;  %s633_s6 = sphi %s666_s6, %s763_s6  }
   0x4   : > { %p21_p0 = scmp.ge.s32.totalorder %s20_s11, 2  ;;  %p405_p1 = scmp.ge.s32.totalorder %s649_s10, 1 }
   0x5   : > { %p108_p2 = scmp.lt.s32.totalorder %s649_s10, 5 }
   0x6   : > { %s768_s11 = smov (%p21_p0, %s20_s11), 0  ;;  %s770_s12 = smov (!%p21_p0, %s23_s12), %s645_s9 }
   0x7   : > { %p109_p3 = pnand %p405_p1, %p108_p2  ;;  %p25_p4 = scmp.ge.s32.totalorder %s770_s12, 2 }
   0x8   : > { %s406_s13 = sshll.u32 (!%p109_p3), %s637_s7, 1  ;;  %p139_p5 = scmp.lt.s32.totalorder (!%p109_p3), %s637_s7, 1 }
   0x9   : > { %s772_s12 = smov (%p25_p4, %s770_s12), 0  ;;  %112 = sbr.rel (%p109_p3) target bundleno = 285 (0x11d), region = 24 }
   0xa   : > { %s130_s14 = sadd.s32 (!%p109_p3), %s633_s6, %s406_s13  ;;  %p410_p7 = scmp.ne.s32.totalorder (!%p109_p3), %s633_s6, 0 }
   0xb   : > { %s407_s15 = sshll.u32 (!%p109_p3), %s130_s14, 4 }
   0xc   : > { %p132_p6 = scmp.lt.s32.totalorder (!%p109_p3), %s407_s15, 63 }
  0x10   : > { %s774_s7 = smov (!%p139_p5, %s637_s7), 1  ;;  %s776_s15 = smov (!%p132_p6, %s407_s15), 63 }
  0x11   : > { %s409_s16 = sshll.u32 %s774_s7, 1  ;;  %s408_s17 = sshll.u32 %s776_s15, 3  ;;  %vm147_vm0 = vcmask (!%p410_p7), 123904   ;;  %v651_v0 = vmov (!%p410_p7), 0.0  }
  0x12   : > { %s702_s20 = scalar_lea.vmem %s762_s1, %s409_s16  ;;  %s707_s23 = scalar_lea.vmem %s761_s0, %s408_s17  ;;  %148 = vst.msk [vmem:[#allocation2] sm:$0x3] (!%p410_p7), %vm147_vm0, %v651_v0 }
  0x13   : > { %146 = sbr.rel (%p410_p7) target bundleno = 26 (0x1a), region = 28 }
  0x1a PF: > { %v149_v1 = vld [vmem:[%s707_s23] sm:$0xff]  ;;  %v150_v2 = vld [vmem:[%s707_s23 + $0x8] sm:$0xff]  ;;  %v151_v3 = vld [vmem:[%s707_s23 + $0x10] sm:$0xff]  ;;  %v652_v4 = vmov 0.0|0.0   ;;  %vm653_vm1 = vmmov 0   ;;  %v654_v13 = vmov 0.0  }
  0x1b   : > { %518 = vmatprep.subr.bf16.mxu0 %v652_v4  ;;  %v519_v5 = vpack.c.bf16 %v150_v2, %v149_v1  ;;  %542 = vmatprep.subr.bf16.mxu1 %v652_v4  ;;  %v240_v6 = vmul.f32 %v149_v1, %v149_v1  ;;  %v241_v7 = vmul.f32 %v150_v2, %v150_v2  ;;  %v152_v8 = vld [vmem:[%s707_s23 + $0x18] sm:$0xff]  ;;  %v153_v11 = vld [vmem:[%s707_s23 + $0x20] sm:$0xff]  ;;  %v154_v12 = vld [vmem:[%s707_s23 + $0x28] sm:$0xff]  ;;  %v655_v51 = vmov 1.0   ;;  %p411_p8 = scmp.ne.s32.totalorder %s633_s6, 1 }
  0x1c   : > { %v242_v9 = vmul.f32 %v151_v3, %v151_v3  ;;  %v243_v10 = vmul.f32 %v152_v8, %v152_v8  ;;  %480 = vmatprep.mubr.msk.f32.mxu0 %vm653_vm1, %v654_v13  ;;  %v522_v15 = vpack.c.bf16 %v152_v8, %v151_v3  ;;  %v244_v17 = vmul.f32 %v153_v11, %v153_v11  ;;  %v155_v19 = vld [vmem:[%s707_s23 + $0x30] sm:$0xff]  ;;  %v156_v20 = vld [vmem:[%s707_s23 + $0x38] sm:$0xff]  ;;  %v157_v25 = vld [vmem:[%s707_s23 + $0x40] sm:$0xff] }
  0x1d   : > { %520 = vmatpush3.bf16.msra.mxu0 %v519_v5  ;;  %v543_v14 = vpack.c.bf16 %v241_v7, %v240_v6  ;;  %v245_v18 = vmul.f32 %v154_v12, %v154_v12  ;;  %v525_v21 = vpack.c.bf16 %v154_v12, %v153_v11  ;;  %515 = vmatprep.mubr.msk.f32.mxu1 %vm653_vm1, %v654_v13  ;;  %v158_v26 = vld [vmem:[%s707_s23 + $0x48] sm:$0xff]  ;;  %v159_v31 = vld [vmem:[%s707_s23 + $0x50] sm:$0xff]  ;;  %v160_v32 = vld [vmem:[%s707_s23 + $0x58] sm:$0xff]  ;;  %vm237_vm2 = vcmask 122880  }
  0x1e   : > { %521 = vmatprep.subr.bf16.mxu0 %v652_v4  ;;  %v546_v16 = vpack.c.bf16 %v243_v10, %v242_v9  ;;  %v246_v23 = vmul.f32 %v155_v19, %v155_v19  ;;  %v247_v24 = vmul.f32 %v156_v20, %v156_v20  ;;  %v528_v27 = vpack.c.bf16 %v156_v20, %v155_v19  ;;  %v161_v37 = vld [vmem:[%s707_s23 + $0x60] sm:$0xff]  ;;  %v162_v38 = vld [vmem:[%s707_s23 + $0x68] sm:$0xff]  ;;  %v163_v43 = vld [vmem:[%s707_s23 + $0x70] sm:$0xff] }
  0x1f   : > { %544 = vmatpush3.bf16.msra.mxu1 %v543_v14  ;;  %v549_v22 = vpack.c.bf16 %v245_v18, %v244_v17  ;;  %v248_v29 = vmul.f32 %v157_v25, %v157_v25  ;;  %v249_v30 = vmul.f32 %v158_v26, %v158_v26  ;;  %v531_v33 = vpack.c.bf16 %v158_v26, %v157_v25  ;;  %v164_v44 = vld [vmem:[%s707_s23 + $0x78] sm:$0xff]  ;;  %v165_v52 = vld [vmem:[#allocation2] sm:$0x1]  ;;  %v239_v54 = vld [vmem:[#allocation2 + $0x1] sm:$0x1] }
  0x20   : > { %545 = vmatprep.subr.bf16.mxu1 %v652_v4  ;;  %v552_v28 = vpack.c.bf16 %v247_v24, %v246_v23  ;;  %v250_v35 = vmul.f32 %v159_v31, %v159_v31  ;;  %v251_v36 = vmul.f32 %v160_v32, %v160_v32  ;;  %v534_v39 = vpack.c.bf16 %v160_v32, %v159_v31 }
  0x21   : > { %523 = vmatpush3.bf16.msra.mxu0 %v522_v15  ;;  %v555_v34 = vpack.c.bf16 %v249_v30, %v248_v29  ;;  %v252_v41 = vmul.f32 %v161_v37, %v161_v37  ;;  %v253_v42 = vmul.f32 %v162_v38, %v162_v38  ;;  %v537_v45 = vpack.c.bf16 %v162_v38, %v161_v37 }
  0x22   : > { %524 = vmatprep.subr.bf16.mxu0 %v652_v4  ;;  %v558_v40 = vpack.c.bf16 %v251_v36, %v250_v35  ;;  %v254_v47 = vmul.f32 %v163_v43, %v163_v43  ;;  %v255_v48 = vmul.f32 %v164_v44, %v164_v44  ;;  %v540_v49 = vpack.c.bf16 %v164_v44, %v163_v43 }
  0x23   : > { %547 = vmatpush3.bf16.msra.mxu1 %v546_v16  ;;  %v561_v46 = vpack.c.bf16 %v253_v42, %v252_v41  ;;  %vm333_vm3 = vcmask (!%p411_p8), 123904  }
  0x24   : > { %548 = vmatprep.subr.bf16.mxu1 %v652_v4  ;;  %v564_v50 = vpack.c.bf16 %v255_v48, %v254_v47 }
  0x25   : > { %526 = vmatpush3.bf16.msra.mxu0 %v525_v21 }
  0x26   : > { %527 = vmatprep.subr.bf16.mxu0 %v652_v4 }
  0x27   : > { %550 = vmatpush3.bf16.msra.mxu1 %v549_v22 }
  0x28   : > { %551 = vmatprep.subr.bf16.mxu1 %v652_v4 }
  0x29   : > { %529 = vmatpush3.bf16.msra.mxu0 %v528_v27 }
  0x2a   : > { %530 = vmatprep.subr.bf16.mxu0 %v652_v4 }
  0x2b   : > { %553 = vmatpush3.bf16.msra.mxu1 %v552_v28 }
  0x2c   : > { %554 = vmatprep.subr.bf16.mxu1 %v652_v4 }
  0x2d   : > { %532 = vmatpush3.bf16.msra.mxu0 %v531_v33 }
  0x2e   : > { %533 = vmatprep.subr.bf16.mxu0 %v652_v4 }
  0x2f   : > { %556 = vmatpush3.bf16.msra.mxu1 %v555_v34 }
  0x30   : > { %557 = vmatprep.subr.bf16.mxu1 %v652_v4 }
  0x31   : > { %535 = vmatpush3.bf16.msra.mxu0 %v534_v39 }
  0x32   : > { %536 = vmatprep.subr.bf16.mxu0 %v652_v4 }
  0x33   : > { %559 = vmatpush3.bf16.msra.mxu1 %v558_v40 }
  0x34   : > { %560 = vmatprep.subr.bf16.mxu1 %v652_v4 }
  0x35   : > { %538 = vmatpush3.bf16.msra.mxu0 %v537_v45 }
  0x36   : > { %539 = vmatprep.subr.bf16.mxu0 %v652_v4 }
  0x37   : > { %562 = vmatpush3.bf16.msra.mxu1 %v561_v46 }
  0x38   : > { %563 = vmatprep.subr.bf16.mxu1 %v652_v4 }
  0x39   : > { %541 = vmatpush3.bf16.msra.mxu0 %v540_v49 }
  0x3b   : > { %565 = vmatpush3.bf16.msra.mxu1 %v564_v50 }
  0x3c   : > { %481 = vmatmul.mubr.f32.vlgmr.msra.gmra.mrb[0].mxu0 %v655_v51 }
  0x3e   : > { %516 = vmatmul.mubr.f32.vlgmr.msra.gmra.mrb[0].mxu1 %v655_v51 }
 0x10e   : > { %331 = sbr.rel (%p411_p8) target bundleno = 285 (0x11d), region = 32 }
 0x10f   : > { %v232_v53 = vpop.f32.mrb[0].mxu0 }
 0x110   : > { %v236_v55 = vadd.f32 %v232_v53, %v165_v52  ;;  %v482_v56 = vpop.f32.mrb[1].mxu0 }
 0x111   : > { %v322_v57 = vpop.f32.mrb[0].mxu1 }
 0x112   : > { %238 = vst.msk [vmem:[#allocation2] sm:$0x1] %vm237_vm2, %v236_v55  ;;  %v326_v58 = vadd.f32 %v322_v57, %v239_v54  ;;  %v517_v59 = vpop.f32.mrb[1].mxu1 }
 0x114   : > { %327 = vst.msk [vmem:[#allocation2 + $0x1] sm:$0x1] %vm237_vm2, %v326_v58 }
 0x11b   : > { %v332_v60 = vld [vmem:[#allocation2] sm:$0x3] }
 0x11c   : > { %334 = vst.msk [vmem:[%s702_s20] sm:$0x3] %vm333_vm3, %v332_v60 }
 0x11d PF: > { %s11_s10 = sadd.s32 1, %s649_s10   ;;  %s763_s6 = smov %s641_s8 }
 0x11e   : > { %p8_p9 = scmp.ge.s32.totalorder %s11_s10, 6   ;;  %s764_s7 = smov %s645_s9 }
 0x11f   : > { %s765_s8 = smov %s768_s11  ;;  %s766_s9 = smov %s772_s12 }
 0x120   :  { %10 = sbr.rel (!%p8_p9) target bundleno = 3 (0x3), region = 62 }

// kernel: transition_block.3
= control target key start
LH: loop header
LB: loop body
LE: loop exit
PB: predicated region body
PF: predicated region fallthrough
CT: control target
= control target key end

     0   :  { %8 = vsyncpa [#allocation4], 0  ;;  %s912_s0 = inlined_call_operand.vmem [shape: f32[2,16], index: 0, kind: input, shape index: {}]   ;;  %s913_s1 = inlined_call_operand.vmem [shape: f32[16,32], index: 1, kind: input, shape index: {}]   ;;  %s914_s2 = inlined_call_operand.vmem [shape: f32[4,128,16], index: 2, kind: input, shape index: {}]   ;;  %s915_s3 = inlined_call_operand.hbm [shape: f32[128,32], index: 3, kind: output, shape index: {}]  }
   0x1   :  { %10 = vsyncpa [#allocation4 + $0x1], 0  ;;  %s715_s12 = smov 0   ;;  %s717_s13 = smov 0  }
   0x2   :  { %s719_s14 = smov 0   ;;  %s721_s15 = smov 0  }
   0x3 LB: > { %s542_s16 = sadd.s32 4294967295, %s690_s15   ;;  %s543_s17 = sadd.s32 4294967294, %s690_s15   ;;  %s690_s15 = sphi %s721_s15, %s921_s15   ;;  %s686_s14 = sphi %s719_s14, %s920_s14   ;;  %s682_s13 = sphi %s717_s13, %s919_s13   ;;  %s678_s12 = sphi %s715_s12, %s918_s12  }
   0x4   : > { %s738_s18 = sadd.s32 1, %s690_s15   ;;  %s65_s19 = sadd.s32 1, %s686_s14 }
   0x5   : > { %s62_s20 = ssub.s32 %s690_s15, %s738_s18  ;;  %p72_p0 = scmp.ne.s32.totalorder %s686_s14, %s682_s13 }
   0x6   : > { %p63_p1 = scmp.eq.s32.totalorder %s62_s20, 0  ;;  %p73_p2 = scmp.eq.s32.totalorder %s690_s15, 0 }
   0x7   : > { %p102_p3 = scmp.eq.s32.totalorder %s542_s16, 3  ;;  %p107_p4 = scmp.ne.s32.totalorder %s682_s13, %s678_s12 }
   0x8   : > { %s751_s21 = scalar_select %p63_p1, %s686_s14, %s65_s19  }
   0x9   : > { %p74_p5 = por %p73_p2, %p72_p0  ;;  %p753_p6 = por %p102_p3, %p72_p0 }
   0xa   : > { %p108_p7 = scmp.eq.s32.totalorder %s543_s17, 3  ;;  %p545_p9 = scmp.ge.s32.totalorder %s690_s15, 4 }
   0xc   : > { %p757_p8 = por %p108_p7, %p107_p4  ;;  %130 = sbr.rel (%p545_p9) target bundleno = 31 (0x1f), region = 24 }
  0x13   : > { %133 = sbr.rel (!%p74_p5) target bundleno = 31 (0x1f), region = 28  ;;  %s135_s24 = sand.u32 (%p74_p5), 1, %s686_s14  }
  0x14   : > { %s563_s25 = sshll.u32 (%p74_p5), %s690_s15, 5  ;;  %s546_s26 = sshll.u32 (%p74_p5), %s135_s24, 7 }
  0x15   : > { %s767_s29 = scalar_lea.vmem (%p74_p5), %s914_s2, %s563_s25  ;;  %s137_s30 = scalar_lea.vmem (%p74_p5), [#allocation2], %s546_s26 }
  0x16   : > { %v198_v0 = vld [vmem:[%s767_s29] sm:$0xff] (%p74_p5)  ;;  %v200_v1 = vld [vmem:[%s767_s29 + $0x8] sm:$0xff] (%p74_p5)  ;;  %v202_v2 = vld [vmem:[%s767_s29 + $0x10] sm:$0xff] (%p74_p5) }
  0x17   : > { %199 = vst [vmem:[%s137_s30] sm:$0xff] (%p74_p5), %v198_v0  ;;  %201 = vst [vmem:[%s137_s30 + $0x8] sm:$0xff] (%p74_p5), %v200_v1  ;;  %v204_v3 = vld [vmem:[%s767_s29 + $0x18] sm:$0xff] (%p74_p5)  ;;  %v206_v4 = vld [vmem:[%s767_s29 + $0x80] sm:$0xff] (%p74_p5) }
  0x18   : > { %203 = vst [vmem:[%s137_s30 + $0x10] sm:$0xff] (%p74_p5), %v202_v2  ;;  %v208_v5 = vld [vmem:[%s767_s29 + $0x88] sm:$0xff] (%p74_p5)  ;;  %205 = vst [vmem:[%s137_s30 + $0x18] sm:$0xff] (%p74_p5), %v204_v3  ;;  %v210_v6 = vld [vmem:[%s767_s29 + $0x90] sm:$0xff] (%p74_p5) }
  0x19   : > { %207 = vst [vmem:[%s137_s30 + $0x20] sm:$0xff] (%p74_p5), %v206_v4  ;;  %209 = vst [vmem:[%s137_s30 + $0x28] sm:$0xff] (%p74_p5), %v208_v5  ;;  %v212_v7 = vld [vmem:[%s767_s29 + $0x98] sm:$0xff] (%p74_p5)  ;;  %v214_v8 = vld [vmem:[%s767_s29 + $0x100] sm:$0xff] (%p74_p5) }
  0x1a   : > { %211 = vst [vmem:[%s137_s30 + $0x30] sm:$0xff] %v210_v6  ;;  %213 = vst [vmem:[%s137_s30 + $0x38] sm:$0xff] %v212_v7  ;;  %v216_v9 = vld [vmem:[%s767_s29 + $0x108] sm:$0xff]  ;;  %v218_v10 = vld [vmem:[%s767_s29 + $0x110] sm:$0xff] }
  0x1b   : > { %215 = vst [vmem:[%s137_s30 + $0x40] sm:$0xff] %v214_v8  ;;  %v220_v11 = vld [vmem:[%s767_s29 + $0x118] sm:$0xff]  ;;  %217 = vst [vmem:[%s137_s30 + $0x48] sm:$0xff] %v216_v9  ;;  %v222_v12 = vld [vmem:[%s767_s29 + $0x180] sm:$0xff] }
  0x1c   : > { %219 = vst [vmem:[%s137_s30 + $0x50] sm:$0xff] %v218_v10  ;;  %221 = vst [vmem:[%s137_s30 + $0x58] sm:$0xff] %v220_v11  ;;  %v224_v13 = vld [vmem:[%s767_s29 + $0x188] sm:$0xff]  ;;  %v226_v14 = vld [vmem:[%s767_s29 + $0x190] sm:$0xff] }
  0x1d   : > { %223 = vst [vmem:[%s137_s30 + $0x60] sm:$0xff] %v222_v12  ;;  %225 = vst [vmem:[%s137_s30 + $0x68] sm:$0xff] %v224_v13  ;;  %v228_v15 = vld [vmem:[%s767_s29 + $0x198] sm:$0xff] }
  0x1e   : > { %227 = vst [vmem:[%s137_s30 + $0x70] sm:$0xff] %v226_v14  ;;  %229 = vst [vmem:[%s137_s30 + $0x78] sm:$0xff] %v228_v15 }
  0x1f PF: > { %p549_p10 = scmp.ge.s32.totalorder %s690_s15, 1  ;;  %p234_p11 = scmp.lt.s32.totalorder %s690_s15, 5 }
  0x21   : > { %p235_p12 = pnand %p549_p10, %p234_p11 }
  0x22   : > { %v356_v16 = vld [vmem:[%s913_s1] sm:$0xff] (!%p235_p12)  ;;  %v357_v17 = vld [vmem:[%s913_s1 + $0x8] sm:$0xff] (!%p235_p12)  ;;  %s794_s8 = sand.u32 (!%p235_p12), 1, %s682_s13   ;;  %vm358_vm0 = vcmask (!%p235_p12), 130048   ;;  %vm456_vm1 = vcmask (!%p235_p12), 261120   ;;  %s564_s27 = sshll.u32 (!%p235_p12), %s542_s16, 9 }
  0x23   : > { %238 = sbr.rel (%p235_p12) target bundleno = 290 (0x122), region = 66  ;;  %v581_v18 = vpack.c.bf16 (!%p235_p12), %v357_v17, %v356_v16  ;;  %s550_s9 = sshll.u32 (!%p235_p12), %s794_s8, 7  ;;  %v800_v19 = vld [vmem:[%s912_s0] ss:$0 sm:$0xff] (!%p235_p12)  ;;  %v805_v20 = vld [vmem:[%s912_s0 + $0x1] ss:$0 sm:$0xff] (!%p235_p12) }
  0x24   : > { %s807_s20 = scalar_lea.vmem (!%p235_p12), [#allocation2], %s550_s9  ;;  %s551_s24 = sshll.u32 (!%p235_p12), %s794_s8, 5 }
  0x25   : > { %582 = vmatprep.subr.bf16.mxu0 (!%p235_p12), %v581_v18  ;;  %585 = vmatprep.subr.bf16.mxu1 (!%p235_p12), %v581_v18  ;;  %v266_v21 = vld [vmem:[%s807_s20] sm:$0xff] (!%p235_p12)  ;;  %v268_v28 = vld [vmem:[%s807_s20 + $0x10] sm:$0xff] (!%p235_p12)  ;;  %v267_v43 = vld [vmem:[%s807_s20 + $0x8] sm:$0xff] (!%p235_p12)  ;;  %s263_s25 = scalar_lea.vmem (!%p235_p12), [#allocation3], %s551_s24  ;;  %s869_s30 = scalar_lea.hbm (!%p235_p12), %s915_s3, %s564_s27 }
  0x26   : > { %v270_v22 = vld [vmem:[%s807_s20 + $0x20] sm:$0xff] (!%p235_p12)  ;;  %584 = vmatpush3.bf16.msra.mxu0 (!%p235_p12), %v581_v18  ;;  %586 = vmatpush3.bf16.msra.mxu1 (!%p235_p12), %v581_v18  ;;  %v288_v25 = vmul.f32 (!%p235_p12), %v800_v19, %v266_v21  ;;  %v272_v29 = vld [vmem:[%s807_s20 + $0x30] sm:$0xff] (!%p235_p12)  ;;  %v290_v33 = vmul.f32 (!%p235_p12), %v800_v19, %v268_v28  ;;  %v271_v44 = vld [vmem:[%s807_s20 + $0x28] sm:$0xff] (!%p235_p12)  ;;  %v289_v58 = vmul.f32 (!%p235_p12), %v800_v19, %v267_v43  ;;  %s475_s26 = sshll.u32 (!%p235_p12), %s263_s25, 4  ;;  %s462_s4 = scalar_lea.sflag (!%p235_p12), [#allocation4], %s794_s8  ;;  %s864_s26 = int_to_ptr.vmem [resolvable:$true] %s475_s26 }
  0x27   : > { %v274_v23 = vld [vmem:[%s807_s20 + $0x40] sm:$0xff] (!%p235_p12)  ;;  %v292_v26 = vmul.f32 (!%p235_p12), %v800_v19, %v270_v22  ;;  %v276_v31 = vld [vmem:[%s807_s20 + $0x50] sm:$0xff] (!%p235_p12)  ;;  %v294_v34 = vmul.f32 (!%p235_p12), %v800_v19, %v272_v29  ;;  %v275_v49 = vld [vmem:[%s807_s20 + $0x48] sm:$0xff] (!%p235_p12)  ;;  %v293_v59 = vmul.f32 (!%p235_p12), %v800_v19, %v271_v44  ;;  %s628_s5 = scalar_lea.vmem (!%p235_p12), %s864_s26, 512  ;;  %s692_s16 = smov (!%p235_p12), [#allocation3]  }
  0x28   : > { %v278_v24 = vld [vmem:[%s807_s20 + $0x60] sm:$0xff] (!%p235_p12)  ;;  %v296_v27 = vmul.f32 (!%p235_p12), %v800_v19, %v274_v23  ;;  %v280_v32 = vld [vmem:[%s807_s20 + $0x70] sm:$0xff] (!%p235_p12)  ;;  %v308_v35 = vadd.f32 (!%p235_p12), %v805_v20, %v288_v25  ;;  %v298_v38 = vmul.f32 (!%p235_p12), %v800_v19, %v276_v31  ;;  %v310_v41 = vadd.f32 (!%p235_p12), %v805_v20, %v290_v33  ;;  %v279_v50 = vld [vmem:[%s807_s20 + $0x68] sm:$0xff] (!%p235_p12)  ;;  %p629_p13 = scmp.ne.s32.totalorder (!%p235_p12), %s864_s26, %s628_s5  ;;  %s632_s6 = sshll.u32 (!%p235_p12), %s692_s16, 4  ;;  %s633_s6 = int_to_ptr.vmem [resolvable:$false] %s632_s6 }
  0x29   : > { %v300_v30 = vmul.f32 (!%p235_p12), %v800_v19, %v278_v24  ;;  %v312_v36 = vadd.f32 (!%p235_p12), %v805_v20, %v292_v26  ;;  %v302_v40 = vmul.f32 (!%p235_p12), %v800_v19, %v280_v32  ;;  %v314_v42 = vadd.f32 (!%p235_p12), %v805_v20, %v294_v34  ;;  %v269_v55 = vld [vmem:[%s807_s20 + $0x18] sm:$0xff] (!%p235_p12)  ;;  %s634_s7 = scalar_lea.vmem (!%p235_p12), %s633_s6, 1024  ;;  %p635_p2 = scmp.lt.s32.totalorder (!%p235_p12), %s864_s26, %s633_s6 }
  0x2a   : > { %v316_v37 = vadd.f32 %v805_v20, %v296_v27  ;;  %v324_v45 = vmax.f32 %v308_v35, 0.0  ;;  %v318_v48 = vadd.f32 %v805_v20, %v298_v38  ;;  %v326_v53 = vmax.f32 %v310_v41, 0.0  ;;  %v273_v60 = vld [vmem:[%s807_s20 + $0x38] sm:$0xff]  ;;  %p630_p0 = pnand %p629_p13, %p753_p6  ;;  %p636_p3 = scmp.lt.s32.totalorder %s634_s7, %s628_s5 }
  0x2b   : > { %v320_v39 = vadd.f32 %v805_v20, %v300_v30  ;;  %v328_v46 = vmax.f32 %v312_v36, 0.0  ;;  %v322_v52 = vadd.f32 %v805_v20, %v302_v40  ;;  %v330_v54 = vmax.f32 %v314_v42, 0.0  ;;  %v277_v1 = vld [vmem:[%s807_s20 + $0x58] sm:$0xff] }
  0x2c   : > { %v332_v47 = vmax.f32 %v316_v37, 0.0  ;;  %v334_v57 = vmax.f32 %v318_v48, 0.0  ;;  %v297_v63 = vmul.f32 %v800_v19, %v275_v49  ;;  %v301_v0 = vmul.f32 %v800_v19, %v279_v50  ;;  %v281_v5 = vld [vmem:[%s807_s20 + $0x78] sm:$0xff]  ;;  %p631_p1 = pneg %p630_p0  ;;  %p637_p4 = por %p636_p3, %p635_p2 }
  0x2d   : > { %v336_v51 = vmax.f32 %v320_v39, 0.0  ;;  %v340_v56 = vadd.f32 %v328_v46, %v324_v45  ;;  %v338_v61 = vmax.f32 %v322_v52, 0.0  ;;  %v342_v62 = vadd.f32 %v330_v54, %v326_v53 }
  0x2e   : > { %v309_v3 = vadd.f32 %v805_v20, %v289_v58  ;;  %v313_v4 = vadd.f32 %v805_v20, %v293_v59  ;;  %v291_v6 = vmul.f32 %v800_v19, %v269_v55  ;;  %v317_v8 = vadd.f32 %v805_v20, %v297_v63  ;;  %p638_p5 = pnand %p637_p4, %p631_p1 }
  0x2f   : > { %v344_v2 = vadd.f32 %v340_v56, %v332_v47  ;;  %v346_v7 = vadd.f32 %v342_v62, %v334_v57  ;;  %v321_v9 = vadd.f32 %v805_v20, %v301_v0  ;;  %v295_v10 = vmul.f32 %v800_v19, %v273_v60 }
  0x30   : > { %v325_v12 = vmax.f32 %v309_v3, 0.0  ;;  %v329_v13 = vmax.f32 %v313_v4, 0.0  ;;  %v299_v14 = vmul.f32 %v800_v19, %v277_v1  ;;  %v333_v16 = vmax.f32 %v317_v8, 0.0 }
  0x31   : > { %v348_v11 = vadd.f32 %v344_v2, %v336_v51  ;;  %v350_v15 = vadd.f32 %v346_v7, %v338_v61  ;;  %v337_v17 = vmax.f32 %v321_v9, 0.0  ;;  %v303_v18 = vmul.f32 %v800_v19, %v281_v5 }
  0x32   : > { %v341_v22 = vadd.f32 %v329_v13, %v325_v12  ;;  %v311_v23 = vadd.f32 %v805_v20, %v291_v6  ;;  %v315_v24 = vadd.f32 %v805_v20, %v295_v10  ;;  %v319_v26 = vadd.f32 %v805_v20, %v299_v14 }
  0x33   : > { %v352_v21 = vmul.f32 0.25, %v348_v11  ;;  %v354_v25 = vmul.f32 0.25, %v350_v15  ;;  %v323_v27 = vadd.f32 %v805_v20, %v303_v18 }
  0x34   : > { %v345_v28 = vadd.f32 %v341_v22, %v333_v16  ;;  %v327_v29 = vmax.f32 %v311_v23, 0.0  ;;  %v331_v30 = vmax.f32 %v315_v24, 0.0  ;;  %v335_v19 = vmax.f32 %v319_v26, 0.0 }
  0x35   : > { %575 = vmatprep.mubr.msk.f32.mxu0 %vm358_vm0, %v352_v21  ;;  %578 = vmatprep.mubr.msk.f32.mxu1 %vm358_vm0, %v354_v25  ;;  %v339_v32 = vmax.f32 %v323_v27, 0.0 }
  0x36   : > { %v349_v31 = vadd.f32 %v345_v28, %v337_v17  ;;  %v343_v33 = vadd.f32 %v331_v30, %v327_v29 }
  0x38   : > { %v353_v34 = vmul.f32 0.25, %v349_v31  ;;  %v347_v35 = vadd.f32 %v343_v33, %v335_v19 }
  0x3a   : > { %576 = vmatmul.mubr.msk.f32.vlgmr.msra.gmra.mrb[0].mxu0 %vm358_vm0, %v353_v34  ;;  %v351_v36 = vadd.f32 %v347_v35, %v339_v32 }
  0x3c   : > { %v355_v37 = vmul.f32 0.25, %v351_v36 }
  0x3e   : > { %579 = vmatmul.mubr.msk.f32.vlgmr.msra.gmra.mrb[0].mxu1 %vm358_vm0, %v355_v37 }
 0x10d   : > { %v577_v20 = vpop.f32.mrb[0].mxu0 }
 0x10e   : > { %458 = vst.msk [vmem:[%s263_s25 + $0x8] sm:$0xff] %vm456_vm1, %v577_v20  ;;  %v437_v38 = vpop.f32.mrb[1].mxu0 }
 0x10f   : > { %457 = vst.msk [vmem:[%s263_s25] sm:$0xff] %vm456_vm1, %v437_v38 }
 0x111   : > { %v580_v39 = vpop.f32.mrb[0].mxu1 }
 0x112   : > { %460 = vst.msk [vmem:[%s263_s25 + $0x18] sm:$0xff] %vm456_vm1, %v580_v39  ;;  %v447_v40 = vpop.f32.mrb[1].mxu1 }
 0x113   : > { %459 = vst.msk [vmem:[%s263_s25 + $0x10] sm:$0xff] %vm456_vm1, %v447_v40 }
 0x114   : > { %641 = shalt.err (!%p638_p5)
}
 0x115   : > { %s642_s9 = scalar_lea.hbm %s869_s30, 512  ;;  %s646_s17 = scalar_lea.hbm %s915_s3, 2048 }
 0x116   : > { %p643_p7 = scmp.ne.s32.totalorder %s869_s30, %s642_s9  ;;  %p647_p11 = scmp.lt.u32.totalorder %s869_s30, %s915_s3 }
 0x117   : > { %p648_p12 = scmp.lt.u32.totalorder %s646_s17, %s642_s9  ;;  %p650_p0 = scmp.lt.u32.totalorder %s642_s9, %s869_s30 }
 0x118   : > { %p644_p9 = pnand %p643_p7, %p753_p6 }
 0x119   : > { %p649_p13 = por %p648_p12, %p647_p11 }
 0x11a   : > { %p645_p10 = pneg %p644_p9 }
 0x11b   : > { %p651_p1 = por %p650_p0, %p649_p13 }
 0x11d   : > { %p652_p2 = pnand %p651_p1, %p645_p10 }
 0x11f   : > { %655 = shalt.err (!%p652_p2)
}
 0x120   : > { %s693_s24 = smov 128   ;;  %s694_s25 = smov 8  }
 0x121   : > { %587 = dma.vmem_to_hbm [thread:$0]  (%p753_p6), %s864_s26, 512, %s869_s30, %s462_s4, %s693_s24, %s693_s24, %s694_s25  }
 0x122 PF: > { %p593_p3 = scmp.ge.s32.totalorder %s690_s15, 2  ;;  %s490_s27 = sand.u32 1, %s678_s12  }
 0x123   : > { %s491_s28 = scalar_lea.sflag [#allocation4], %s490_s27 }
 0x124   : > { %p590_p4 = pnand %p593_p3, %p757_p8 }
 0x126   : > { %673 = dma.done.wait (!%p590_p4), %s491_s28, 512  }
 0x127   : > { %675 = vsyncadd (!%p590_p4), %s491_s28, 4294966784  ;;  %p13_p5 = scmp.ge.s32.totalorder %s738_s18, 6   ;;  %s918_s12 = smov %s682_s13 }
 0x128   : > { %s919_s13 = smov %s686_s14  ;;  %s920_s14 = smov %s751_s21 }
 0x129   : > { %s921_s15 = smov %s738_s18  ;;  %15 = sbr.rel (!%p13_p5) target bundleno = 3 (0x3), region = 110 }
 0x130   :  { %496 = vsyncpa [#allocation4], 1 }
 0x131   :  { %498 = vsyncpa [#allocation4 + $0x1], 1 }

</bundles_post_ra>
